<compile_context>
chip_gen: v7x
topology: tpu7x:2x2x1
jax: 0.10.0
libtpu: 0.0.40
codegen_flags: <defaults>
</compile_context>

<pallas_src>
import functools

import jax
import jax.numpy as jnp
from jax.experimental import pallas as pl
from jax.experimental.pallas import tpu as pltpu


def _round_up(a, m):
    return ((a + m - 1) // m) * m


def _tpu_params():
    """Returns (preferred matmul M-tile, VMEM budget bytes) for this TPU gen."""
    kind = ""
    try:
        kind = jax.devices()[0].device_kind.lower()
    except Exception:
        pass
    if "v2" in kind or "v3" in kind:
        return 128, 12 * 1024 * 1024          # small VMEM generations
    if "v4" in kind or "v5" in kind:
        return 128, 96 * 1024 * 1024          # 128x128 MXU, 128 MiB VMEM
    if "7" in kind:
        return 256, 48 * 1024 * 1024          # 256x256 MXU, 64 MiB VMEM (v7x)
    return 256, 96 * 1024 * 1024              # v6e default: 256 MXU, 128 MiB


def _conv_bn_silu_kernel(xw_ref, t_ref, sb_ref, o_ref, *scratch, K, TH, WC1):
    # xw_ref : (TH + 2*pad, Wp*C1) input row window (with vertical halo)
    # t_ref  : (K*Wp*C1, W*C2)     block-banded conv weights, all K taps stacked
    # sb_ref : (2, W*C2) f32       row 0 = folded BN scale, row 1 = folded BN bias
    # o_ref  : (TH//R, R*W*C2)     output tile (R rows folded into lanes if W*C2<128)
    # scratch: (TH, K*Wp*C1)       folded-LHS VMEM scratch (only when K > 1)
    if K == 1:
        lhs = xw_ref[...]
    else:
        lhs_ref = scratch[0]
        # K shifted row-window copies build the im2col-over-rows LHS; these ride
        # spare vld/vst slots and let the conv be a single deep MXU contraction.
        for ky in range(K):
            lhs_ref[:, ky * WC1:(ky + 1) * WC1] = xw_ref[pl.ds(ky, TH), :]
        lhs = lhs_ref[...]

    acc = jnp.dot(lhs, t_ref[...], preferred_element_type=jnp.float32)

    # Fused BatchNorm (eval) + SiLU epilogue, kept in f32 on the accumulator.
    y = acc * sb_ref[0] + sb_ref[1]
    y = y * jax.nn.sigmoid(y)
    o_ref[...] = y.reshape(o_ref.shape).astype(o_ref.dtype)


def _conv_bn_silu_impl(x_nchw, weight_oihw, gamma, beta, running_mean,
                       running_var, eps=1e-5):
    """Forward of Conv(c1, c2, k, s=1, p=autopad(k), g=1, d=1, act=SiLU), BN eval."""
    N, C1, H, W = x_nchw.shape
    C2, C1w, KH, KW = weight_oihw.shape
    assert C1 == C1w, "groups != 1 is not supported"
    assert KH == KW and KH % 2 == 1, "only square odd kernels (autopad, d=1) supported"
    K = KH
    pad = K // 2
    dtype = x_nchw.dtype
    itemsize = jnp.dtype(dtype).itemsize

    Wp = W + 2 * pad
    WC1 = Wp * C1
    WC2 = W * C2
    KWC1 = K * WC1

    mxu, vmem_budget = _tpu_params()

    # ---- Output row-tile height: as large as the MXU wants, never (much)
    # ---- larger than H itself; multiple of 8 (sublane granule).
    TH = min(mxu, _round_up(H, 8))
    # Keep >= 2 parallel grid points so both v7x TensorCores get work.
    if N * pl.cdiv(H, TH) < 2 and H > 8:
        TH = min(TH, max(8, _round_up(pl.cdiv(H, 2), 8)))

    # ---- Shrink TH until the per-step working set fits the VMEM budget.
    def vmem_bytes(th):
        lane = lambda n: _round_up(n, 128)
        sub = lambda n: _round_up(n, 8)
        b = 2 * sub(th + 2 * pad) * lane(WC1) * itemsize   # input window, 2x buffered
        b += 2 * sub(th) * lane(WC2) * itemsize            # output tile, 2x buffered
        b += sub(KWC1) * lane(WC2) * itemsize              # weight slab, 1x buffered
        b += 8 * lane(WC2) * 4                             # BN scale/bias, 1x buffered
        if K > 1:
            b += sub(th) * lane(KWC1) * itemsize           # folded-LHS scratch
        return b

    while TH > 8 and vmem_bytes(TH) > vmem_budget:
        TH = max(8, _round_up(TH // 2, 8))

    HT = pl.cdiv(H, TH)
    Hpad = HT * TH
    THw = TH + 2 * pad
    G = N * HT

    # Fold R output rows into the lane dim when W*C2 is narrower than a vreg row,
    # so the output store stays lane-dense (>= 128 lanes, no masked vst).
    R = 1
    while R * WC2 < 128 and TH % (2 * R) == 0:
        R *= 2
    # TODO(synk): for very small W*C2 the matmul itself still runs at WC2 lanes;
    #             a 2-D (row+width) banded weight slab would widen that too.

    # ---- Fold BatchNorm (eval) into a per-channel affine, tiled over W so it
    # ---- broadcasts directly over the (TH, W*C2) output layout. One operand.
    inv_std = jax.lax.rsqrt(running_var.astype(jnp.float32) + eps)
    scale_c = gamma.astype(jnp.float32) * inv_std
    bias_c = beta.astype(jnp.float32) - running_mean.astype(jnp.float32) * scale_c
    sb = jnp.stack([jnp.tile(scale_c, W), jnp.tile(bias_c, W)])            # (2, W*C2)

    # ---- Input: NCHW -> NHWC -> pad -> fold (W, C1) into lanes -> overlapping
    # ---- row windows of THw = TH + 2*pad rows (vertical halo), one per row tile.
    x = jnp.transpose(x_nchw, (0, 2, 3, 1))
    x = jnp.pad(x, ((0, 0), (pad, pad + (Hpad - H)), (pad, pad), (0, 0)))
    x = x.reshape(N, Hpad + 2 * pad, WC1)
    xw = jnp.stack([x[:, h * TH: h * TH + THw] for h in range(HT)], axis=1)
    xw = xw.reshape(G, THw, WC1)

    # ---- Block-banded (Toeplitz) weights, all K vertical taps concatenated:
    #      T[ky*Wp*C1 + (w+kx)*C1 + c1, w*C2 + c2] = weight[c2, c1, ky, kx]
    w_hwio = jnp.transpose(weight_oihw, (2, 3, 1, 0)).astype(jnp.float32)  # (K,K,C1,C2)
    kx_i = jnp.arange(K)[:, None, None]
    wp_i = jnp.arange(Wp)[None, :, None]
    w_i = jnp.arange(W)[None, None, :]
    S = (wp_i == w_i + kx_i).astype(jnp.float32)                           # (K,Wp,W)
    T = jnp.einsum("xpw,yxio->ypiwo", S, w_hwio)                           # (K,Wp,C1,W,C2)
    T = T.reshape(KWC1, WC2).astype(dtype)

    kernel = functools.partial(_conv_bn_silu_kernel, K=K, TH=TH, WC1=WC1)

    cost = pl.CostEstimate(
        flops=2 * G * TH * KWC1 * WC2,
        transcendentals=G * TH * WC2,
        bytes_accessed=(xw.size + T.size + G * TH * WC2) * itemsize + sb.size * 4,
    )

    scratch_shapes = [pltpu.VMEM((TH, KWC1), dtype)] if K > 1 else []

    out2 = pl.pallas_call(
        kernel,
        out_shape=jax.ShapeDtypeStruct((G, TH // R, R * WC2), dtype),
        grid_spec=pltpu.PrefetchScalarGridSpec(
            num_scalar_prefetch=0,
            grid=(G,),
            in_specs=[
                # Row window with halo: input VMEM scales with TH, not H.
                pl.BlockSpec((None, THw, WC1), lambda g: (g, 0, 0)),
                # Constant operands: single-buffered (index map is constant).
                pl.BlockSpec((KWC1, WC2), lambda g: (0, 0),
                             pipeline_mode=pl.Buffered(1)),
                pl.BlockSpec((2, WC2), lambda g: (0, 0),
                             pipeline_mode=pl.Buffered(1)),
            ],
            out_specs=pl.BlockSpec((None, TH // R, R * WC2), lambda g: (g, 0, 0)),
            scratch_shapes=scratch_shapes,
        ),
        compiler_params=pltpu.CompilerParams(
            dimension_semantics=("parallel",),
            vmem_limit_bytes=int(vmem_budget),
        ),
        cost_estimate=cost,
    )(xw, T, sb)

    # Unfold lanes -> (W, C2), drop row padding, back to NCHW.
    out = out2.reshape(N, Hpad, W, C2)[:, :H]
    return jnp.transpose(out, (0, 3, 1, 2))


conv_bn_silu = jax.jit(_conv_bn_silu_impl)


def _reference(x_nchw, weight_oihw, gamma, beta, running_mean, running_var,
               eps=1e-5):
    pad = weight_oihw.shape[-1] // 2
    y = jax.lax.conv_general_dilated(
        x_nchw.astype(jnp.float32), weight_oihw.astype(jnp.float32),
        window_strides=(1, 1), padding=((pad, pad), (pad, pad)),
        dimension_numbers=("NCHW", "OIHW", "NCHW"))
    inv_std = 1.0 / jnp.sqrt(running_var + eps)
    scale = (gamma * inv_std).reshape(1, -1, 1, 1)
    bias = (beta - running_mean * gamma * inv_std).reshape(1, -1, 1, 1)
    y = y * scale + bias
    return y * jax.nn.sigmoid(y)


def _run_case(name, key, N, C1, C2, K, H, W, dtype=jnp.float32,
              rtol=2e-4, atol=2e-4):
    kx, kw, kg, kb, km, kv = jax.random.split(key, 6)
    x = jax.random.normal(kx, (N, C1, H, W), dtype=jnp.float32)
    weight = jax.random.normal(kw, (C2, C1, K, K), dtype=jnp.float32) * 0.1
    gamma = 1.0 + 0.1 * jax.random.normal(kg, (C2,), dtype=jnp.float32)
    beta = 0.1 * jax.random.normal(kb, (C2,), dtype=jnp.float32)
    rmean = 0.1 * jax.random.normal(km, (C2,), dtype=jnp.float32)
    rvar = 1.0 + 0.1 * jax.random.uniform(kv, (C2,), dtype=jnp.float32)

    out = conv_bn_silu(x.astype(dtype), weight.astype(dtype),
                       gamma, beta, rmean, rvar)
    out = jax.block_until_ready(out)

    ref = _reference(x, weight, gamma, beta, rmean, rvar)
    assert out.shape == (N, C2, H, W), (name, out.shape)
    assert jnp.allclose(out.astype(jnp.float32), ref, rtol=rtol, atol=atol), \
        f"mismatch vs reference: {name}"


if __name__ == "__main__":
    key = jax.random.PRNGKey(0)
    k1, k2, k3, k4 = jax.random.split(key, 4)

    # Conv(c1=4, c2=8, k=3) — batch=2, spatial 16x16 (lane dim W*C2 = 128).
    _run_case("f32_k3", k1, N=2, C1=4, C2=8, K=3, H=16, W=16)
    # Multi-row-tile path (halo windows) + larger kernel: Conv(3,16,k=5), 24x24.
    _run_case("f32_k5", k2, N=1, C1=3, C2=16, K=5, H=24, W=24)
    # Pointwise conv with narrow W*C2 (row->lane fold path): Conv(8,4,k=1), 8x8.
    _run_case("f32_k1", k3, N=2, C1=8, C2=4, K=1, H=8, W=8)
    # bf16 activations/weights (f32 accumulate + epilogue), loose tolerance.
    _run_case("bf16_k3", k4, N=2, C1=4, C2=8, K=3, H=16, W=16,
              dtype=jnp.bfloat16, rtol=5e-2, atol=5e-2)

    print("KERNEL_OK")
</pallas_src>

<mosaic_0001>
module attributes {stable_mosaic.version = 11 : i64} {
  func.func @_conv_bn_silu_kernel(%arg0: i32, %arg1: memref<1x18x72xf32, #tpu.memory_space<vmem>>, %arg2: memref<216x128xf32, #tpu.memory_space<vmem>>, %arg3: memref<2x128xf32, #tpu.memory_space<vmem>>, %arg4: memref<1x16x128xf32, #tpu.memory_space<vmem>>, %arg5: memref<16x216xf32, #tpu.memory_space<vmem>>) attributes {dimension_semantics = [#tpu.dimension_semantics<parallel>], iteration_bounds = array<i64: 2>, scalar_prefetch = 0 : i64, scratch_operands = 1 : i64, tpu.core_type = #tpu.core_type<tc>, window_params = [{transform_indices = @transform_0, window_bounds = array<i64: 1, 18, 72>}, {pipeline_mode = #tpu.pipeline_mode<synchronous>, transform_indices = @transform_1, window_bounds = array<i64: 216, 128>}, {pipeline_mode = #tpu.pipeline_mode<synchronous>, transform_indices = @transform_2, window_bounds = array<i64: 2, 128>}, {transform_indices = @transform_3, window_bounds = array<i64: 1, 16, 128>}]} {
    %c0 = arith.constant 0 : index
    %c0_0 = arith.constant 0 : index
    %c0_1 = arith.constant 0 : index
    %0 = vector.load %arg1[%c0, %c0_0, %c0_1] : memref<1x18x72xf32, #tpu.memory_space<vmem>>, vector<1x16x72xf32>
    %1 = vector.shape_cast %0 : vector<1x16x72xf32> to vector<16x72xf32>
    %c0_2 = arith.constant 0 : index
    %c0_3 = arith.constant 0 : index
    %2 = vector.load %arg5[%c0_2, %c0_3] : memref<16x216xf32, #tpu.memory_space<vmem>>, vector<16x72xf32>
    tpu.vector_store %arg5[%c0_2, %c0_3], %1 {strides = array<i32>} : memref<16x216xf32, #tpu.memory_space<vmem>>, vector<16x72xf32>,
    %c0_4 = arith.constant 0 : index
    %c1 = arith.constant 1 : index
    %c0_5 = arith.constant 0 : index
    %3 = vector.load %arg1[%c0_4, %c1, %c0_5] : memref<1x18x72xf32, #tpu.memory_space<vmem>>, vector<1x16x72xf32>
    %4 = vector.shape_cast %3 : vector<1x16x72xf32> to vector<16x72xf32>
    %c0_6 = arith.constant 0 : index
    %c72 = arith.constant 72 : index
    %5 = vector.load %arg5[%c0_6, %c72] : memref<16x216xf32, #tpu.memory_space<vmem>>, vector<16x72xf32>
    tpu.vector_store %arg5[%c0_6, %c72], %4 {strides = array<i32>} : memref<16x216xf32, #tpu.memory_space<vmem>>, vector<16x72xf32>,
    %c0_7 = arith.constant 0 : index
    %c2 = arith.constant 2 : index
    %c0_8 = arith.constant 0 : index
    %6 = vector.load %arg1[%c0_7, %c2, %c0_8] : memref<1x18x72xf32, #tpu.memory_space<vmem>>, vector<1x16x72xf32>
    %7 = vector.shape_cast %6 : vector<1x16x72xf32> to vector<16x72xf32>
    %c0_9 = arith.constant 0 : index
    %c144 = arith.constant 144 : index
    %8 = vector.load %arg5[%c0_9, %c144] : memref<16x216xf32, #tpu.memory_space<vmem>>, vector<16x72xf32>
    tpu.vector_store %arg5[%c0_9, %c144], %7 {strides = array<i32>} : memref<16x216xf32, #tpu.memory_space<vmem>>, vector<16x72xf32>,
    %c0_10 = arith.constant 0 : index
    %c0_11 = arith.constant 0 : index
    %9 = vector.load %arg5[%c0_10, %c0_11] : memref<16x216xf32, #tpu.memory_space<vmem>>, vector<16x216xf32>
    %c0_12 = arith.constant 0 : index
    %c0_13 = arith.constant 0 : index
    %10 = vector.load %arg2[%c0_12, %c0_13] : memref<216x128xf32, #tpu.memory_space<vmem>>, vector<216x128xf32>
    %cst = arith.constant dense<0.000000e+00> : vector<16x128xf32>
    %11 = tpu.matmul %9, %10, %cst {dimension_numbers = #tpu.dot_dimension_numbers<[1], [0], [0], [1], [0, 0, 1, 1], [], []>} : vector<16x216xf32>, vector<216x128xf32>, vector<16x128xf32> -> vector<16x128xf32>
    %c0_14 = arith.constant 0 : index
    %c0_15 = arith.constant 0 : index
    %12 = vector.load %arg3[%c0_14, %c0_15] : memref<2x128xf32, #tpu.memory_space<vmem>>, vector<1x128xf32>
    %13 = vector.shape_cast %12 : vector<1x128xf32> to vector<128xf32>
    %14 = vector.shape_cast %13 : vector<128xf32> to vector<1x128xf32>
    %15 = vector.broadcast %14 : vector<1x128xf32> to vector<16x128xf32>
    %16 = arith.mulf %11, %15 : vector<16x128xf32>
    %c1_16 = arith.constant 1 : index
    %c0_17 = arith.constant 0 : index
    %17 = vector.load %arg3[%c1_16, %c0_17] : memref<2x128xf32, #tpu.memory_space<vmem>>, vector<1x128xf32>
    %18 = vector.shape_cast %17 : vector<1x128xf32> to vector<128xf32>
    %19 = vector.shape_cast %18 : vector<128xf32> to vector<1x128xf32>
    %20 = vector.broadcast %19 : vector<1x128xf32> to vector<16x128xf32>
    %21 = arith.addf %16, %20 : vector<16x128xf32>
    %22 = arith.negf %21 : vector<16x128xf32>
    %23 = math.exp %22 : vector<16x128xf32>
    %cst_18 = arith.constant 1.000000e+00 : f32
    %24 = vector.broadcast %cst_18 : f32 to vector<16x128xf32>
    %25 = arith.addf %24, %23 : vector<16x128xf32>
    %26 = arith.divf %24, %25 : vector<16x128xf32>
    %27 = arith.mulf %21, %26 : vector<16x128xf32>
    %c0_19 = arith.constant 0 : index
    %c0_20 = arith.constant 0 : index
    %c0_21 = arith.constant 0 : index
    %28 = vector.load %arg4[%c0_19, %c0_20, %c0_21] : memref<1x16x128xf32, #tpu.memory_space<vmem>>, vector<1x16x128xf32>
    %29 = vector.shape_cast %28 : vector<1x16x128xf32> to vector<16x128xf32>
    %30 = vector.shape_cast %27 : vector<16x128xf32> to vector<1x16x128xf32>
    tpu.vector_store %arg4[%c0_19, %c0_20, %c0_21], %30 {strides = array<i32>} : memref<1x16x128xf32, #tpu.memory_space<vmem>>, vector<1x16x128xf32>,
    return
  }
  func.func @transform_0(%arg0: i32) -> (i32, i32, i32) {
    %c0_i32 = arith.constant 0 : i32
    %c0_i32_0 = arith.constant 0 : i32
    %c0_i32_1 = arith.constant 0 : i32
    return %arg0, %c0_i32, %c0_i32_0 : i32, i32, i32
  }
  func.func @transform_1(%arg0: i32) -> (i32, i32) {
    %c0_i32 = arith.constant 0 : i32
    %c0_i32_0 = arith.constant 0 : i32
    %c0_i32_1 = arith.constant 0 : i32
    return %c0_i32, %c0_i32_0 : i32, i32
  }
  func.func @transform_2(%arg0: i32) -> (i32, i32) {
    %c0_i32 = arith.constant 0 : i32
    %c0_i32_0 = arith.constant 0 : i32
    %c0_i32_1 = arith.constant 0 : i32
    return %c0_i32, %c0_i32_0 : i32, i32
  }
  func.func @transform_3(%arg0: i32) -> (i32, i32, i32) {
    %c0_i32 = arith.constant 0 : i32
    %c0_i32_0 = arith.constant 0 : i32
    %c0_i32_1 = arith.constant 0 : i32
    return %arg0, %c0_i32, %c0_i32_0 : i32, i32, i32
  }
}

</mosaic_0001>

<bundles_post_ra>
// kernel: tile.18
= control target key start
LH: loop header
LB: loop body
LE: loop exit
PB: predicated region body
PF: predicated region fallthrough
CT: control target
= control target key end

     0   :  { %s131_s10 = smov 120   ;;  %s132_s11 = smov 104   ;;  %vm3_vm0 = vcmask 64512   ;;  %vm9_vm1 = vcmask 1048512   ;;  %vm15_vm2 = vcmask 982912   ;;  %vm21_vm3 = vcmask 917312   ;;  %s207_s0 = inlined_call_operand.vmem [shape: f32[16,8], index: 0, kind: input, shape index: {}]   ;;  %s208_s1 = inlined_call_operand.vmem [shape: f32[1,128], index: 1, kind: output, shape index: {}]  }
   0x1   :  { %v101_v0 = vld [vmem:[%s207_s0 + $0xf] sm:$0x1]   ;;  %v103_v1 = vld [vmem:[%s207_s0 + $0xd] sm:$0x1]   ;;  %v102_v2 = vld [vmem:[%s207_s0 + $0xe] sm:$0x1]  }
   0x2   :  { %7 = vrot.lane.b32.xlu0 %v101_v0, %s131_s10  ;;  %19 = vrot.lane.b32.xlu1 %v103_v1, %s132_s11  ;;  %v104_v3 = vld [vmem:[%s207_s0 + $0xc] sm:$0x1]   ;;  %s133_s16 = smov 112   ;;  %s134_s17 = smov 96   ;;  %v105_v4 = vld [vmem:[%s207_s0 + $0xb] sm:$0x1]  }
   0x3   :  { %v106_v5 = vld [vmem:[%s207_s0 + $0xa] sm:$0x1]   ;;  %v2_v6 = vld [vmem:[%s207_s0] sm:$0x1]   ;;  %s135_s24 = smov 88   ;;  %s136_s25 = smov 80  }
   0x4   :  { %4 = vst.msk [vmem:[#allocation0] sm:$0x1] %vm3_vm0, %v2_v6   ;;  %v107_v7 = vld [vmem:[%s207_s0 + $0x9] sm:$0x1]   ;;  %v108_v8 = vld [vmem:[%s207_s0 + $0x8] sm:$0x1]  }
   0x5   :  { %s137_s30 = smov 72   ;;  %s138_s2 = smov 64   ;;  %v109_v9 = vld [vmem:[%s207_s0 + $0x7] sm:$0x1]   ;;  %v110_v10 = vld [vmem:[%s207_s0 + $0x6] sm:$0x1]  }
   0x6   :  { %13 = vrot.lane.b32.xlu0 %v102_v2, %s133_s16  ;;  %25 = vrot.lane.b32.xlu1 %v104_v3, %s134_s17  ;;  %s139_s7 = smov 56   ;;  %s140_s8 = smov 48   ;;  %v111_v11 = vld [vmem:[%s207_s0 + $0x5] sm:$0x1]   ;;  %v112_v12 = vld [vmem:[%s207_s0 + $0x4] sm:$0x1]  }
   0x7   :  { %s141_s13 = smov 40   ;;  %s142_s14 = smov 32   ;;  %v113_v13 = vld [vmem:[%s207_s0 + $0x3] sm:$0x1]   ;;  %v114_v14 = vld [vmem:[%s207_s0 + $0x2] sm:$0x1]  }
   0x8   :  { %s143_s19 = smov 24   ;;  %s144_s20 = smov 16   ;;  %v115_v15 = vld [vmem:[%s207_s0 + $0x1] sm:$0x1]   ;;  %vm27_vm4 = vcmask 851712   ;;  %vm33_vm5 = vcmask 786112  }
   0x9   :  { %s145_s0 = smov 8   ;;  %vm39_vm6 = vcmask 720512   ;;  %vm45_vm7 = vcmask 654912   ;;  %vm51_vm8 = vcmask 589312   ;;  %vm57_vm9 = vcmask 523712  }
   0xa   :  { %31 = vrot.lane.b32.xlu0 %v105_v4, %s135_s24  ;;  %37 = vrot.lane.b32.xlu1 %v106_v5, %s136_s25  ;;  %vm63_vm10 = vcmask 458112   ;;  %vm69_vm11 = vcmask 392512   ;;  %vm75_vm12 = vcmask 326912   ;;  %vm81_vm13 = vcmask 261312  }
   0xb   :  { %vm87_vm14 = vcmask 195712   ;;  %vm93_vm15 = vcmask 130112  }
   0xe   :  { %43 = vrot.lane.b32.xlu0 %v107_v7, %s137_s30  ;;  %49 = vrot.lane.b32.xlu1 %v108_v8, %s138_s2 }
  0x12   :  { %55 = vrot.lane.b32.xlu0 %v109_v9, %s139_s7  ;;  %61 = vrot.lane.b32.xlu1 %v110_v10, %s140_s8 }
  0x16   :  { %67 = vrot.lane.b32.xlu0 %v111_v11, %s141_s13  ;;  %73 = vrot.lane.b32.xlu1 %v112_v12, %s142_s14 }
  0x1a   :  { %79 = vrot.lane.b32.xlu0 %v113_v13, %s143_s19  ;;  %85 = vrot.lane.b32.xlu1 %v114_v14, %s144_s20 }
  0x1e   :  { %91 = vrot.lane.b32.xlu0 %v115_v15, %s145_s0 }
  0x74   :  { %v8_v16 = vpop.permute.xlu0 %7   ;;  %v20_v17 = vpop.permute.xlu1 %19  }
  0x75   :  { %10 = vst.msk [vmem:[#allocation0] sm:$0x1] %vm9_vm1, %v8_v16  }
  0x78   :  { %v14_v18 = vpop.permute.xlu0 %13   ;;  %v26_v19 = vpop.permute.xlu1 %25  }
  0x79   :  { %16 = vst.msk [vmem:[#allocation0] sm:$0x1] %vm15_vm2, %v14_v18  }
  0x7a   :  { %22 = vst.msk [vmem:[#allocation0] sm:$0x1] %vm21_vm3, %v20_v17  }
  0x7b   :  { %28 = vst.msk [vmem:[#allocation0] sm:$0x1] %vm27_vm4, %v26_v19  }
  0x7c   :  { %v32_v20 = vpop.permute.xlu0 %31   ;;  %v38_v21 = vpop.permute.xlu1 %37  }
  0x7d   :  { %34 = vst.msk [vmem:[#allocation0] sm:$0x1] %vm33_vm5, %v32_v20  }
  0x7e   :  { %40 = vst.msk [vmem:[#allocation0] sm:$0x1] %vm39_vm6, %v38_v21  }
  0x80   :  { %v44_v22 = vpop.permute.xlu0 %43   ;;  %v50_v23 = vpop.permute.xlu1 %49  }
  0x81   :  { %46 = vst.msk [vmem:[#allocation0] sm:$0x1] %vm45_vm7, %v44_v22  }
  0x82   :  { %52 = vst.msk [vmem:[#allocation0] sm:$0x1] %vm51_vm8, %v50_v23  }
  0x84   :  { %v56_v24 = vpop.permute.xlu0 %55   ;;  %v62_v25 = vpop.permute.xlu1 %61  }
  0x85   :  { %58 = vst.msk [vmem:[#allocation0] sm:$0x1] %vm57_vm9, %v56_v24  }
  0x86   :  { %64 = vst.msk [vmem:[#allocation0] sm:$0x1] %vm63_vm10, %v62_v25  }
  0x88   :  { %v68_v26 = vpop.permute.xlu0 %67   ;;  %v74_v27 = vpop.permute.xlu1 %73  }
  0x89   :  { %70 = vst.msk [vmem:[#allocation0] sm:$0x1] %vm69_vm11, %v68_v26  }
  0x8a   :  { %76 = vst.msk [vmem:[#allocation0] sm:$0x1] %vm75_vm12, %v74_v27  }
  0x8c   :  { %v80_v28 = vpop.permute.xlu0 %79   ;;  %v86_v29 = vpop.permute.xlu1 %85  }
  0x8d   :  { %82 = vst.msk [vmem:[#allocation0] sm:$0x1] %vm81_vm13, %v80_v28  }
  0x8e   :  { %88 = vst.msk [vmem:[#allocation0] sm:$0x1] %vm87_vm14, %v86_v29  }
  0x90   :  { %v92_v30 = vpop.permute.xlu0 %91  }
  0x91   :  { %94 = vst.msk [vmem:[#allocation0] sm:$0x1] %vm93_vm15, %v92_v30  }
  0x98   :  { %v98_v31 = vld [vmem:[#allocation0] sm:$0x1] }
  0x99   :  { %100 = vst [vmem:[%s208_s1] sm:$0x1] %v98_v31 }

// kernel: tile.13
= control target key start
LH: loop header
LB: loop body
LE: loop exit
PB: predicated region body
PF: predicated region fallthrough
CT: control target
= control target key end

     0   :  { %s28_s0 = inlined_call_operand.vmem [shape: f32[8], index: 0, kind: input, shape index: {}]   ;;  %s29_s1 = inlined_call_operand.vmem [shape: f32[16,8], index: 1, kind: output, shape index: {}]  }
   0x1   :  { %v4_v0 = vld [vmem:[%s28_s0] ss:$0 sm:$0xff] }
   0x2   :  { %5 = vst [vmem:[%s29_s1] sm:$0xff] %v4_v0  ;;  %8 = vst [vmem:[%s29_s1 + $0x8] sm:$0xff] %v4_v0 }

// kernel: _conv_bn_silu_impl.1
= control target key start
LH: loop header
LB: loop body
LE: loop exit
PB: predicated region body
PF: predicated region fallthrough
CT: control target
= control target key end

     0   :  { %8 = vsyncpa [#allocation4], 0  ;;  %s1139_s0 = inlined_call_operand.hbm [shape: f32[2,18,72], index: 0, kind: input, shape index: {}]   ;;  %s1140_s1 = inlined_call_operand.hbm [shape: f32[216,128], index: 1, kind: input, shape index: {}]   ;;  %s1141_s2 = inlined_call_operand.hbm [shape: f32[2,128], index: 2, kind: input, shape index: {}]   ;;  %s1142_s3 = inlined_call_operand.hbm [shape: f32[2,16,128], index: 3, kind: output, shape index: {}]  }
   0x1   :  { %10 = vsyncpa [#allocation4 + $0x1], 0 }
   0x2   :  { %11 = vsyncpa [#allocation7], 0 }
   0x3   :  { %12 = vsyncpa [#allocation5], 0 }
   0x4   :  { %14 = vsyncpa [#allocation5 + $0x1], 0  ;;  %s864_s12 = smov 0   ;;  %s866_s13 = smov 0  }
   0x5   :  { %s868_s14 = smov 0   ;;  %s870_s15 = smov 0  }
   0x6 LB: > { %s885_s16 = sadd.s32 4294967295, %s830_s15   ;;  %s499_s17 = sadd.s32 4294967294, %s830_s15   ;;  %s830_s15 = sphi %s870_s15, %s1162_s15   ;;  %s826_s14 = sphi %s868_s14, %s1161_s14   ;;  %s822_s13 = sphi %s866_s13, %s1160_s13   ;;  %s818_s12 = sphi %s864_s12, %s1159_s12  }
   0x7   : > { %p40_p0 = scmp.ne.s32.totalorder %s822_s13, %s818_s12  ;;  %p1143_p1 = scmp.eq.s32.totalorder %s885_s16, 0 }
   0x8   : > { %p112_p3 = scmp.eq.s32.totalorder %s499_s17, 1  ;;  %p500_p5 = scmp.ge.s32.totalorder %s830_s15, 1 }
   0x9   : > { %p894_p4 = por %p1143_p1, %p40_p0  ;;  %p119_p7 = scmp.lt.s32.totalorder %s830_s15, 3 }
   0xa   : > { %p899_p6 = por %p112_p3, %p40_p0  ;;  %s832_s21 = smov [#allocation6]  }
   0xb   : > { %s1146_s18 = scalar_select %p894_p4, 1, 0 }
   0xc   : > { %s1147_s19 = scalar_select %p899_p6, 1, 0 }
   0xd   : > { %p904_p8 = pnand %p500_p5, %p119_p7  ;;  %s131_s22 = sshll.u32 %s832_s21, 4  ;;  %s908_s22 = int_to_ptr.vmem [resolvable:$true] %s131_s22 }
   0xe   : > { %s833_s24 = smov [#allocation8]   ;;  %s674_s28 = scalar_lea.hbm %s1140_s1, 3456 }
   0xf   : > { %p603_p9 = pneg %p904_p8  ;;  %s145_s25 = sshll.u32 %s833_s24, 4  ;;  %s919_s25 = int_to_ptr.vmem [resolvable:$true] %s145_s25 }
  0x10   : > { %p675_p12 = scmp.ne.s32.totalorder %s1140_s1, %s674_s28  ;;  %p681_p5 = scmp.lt.u32.totalorder %s674_s28, %s1140_s1 }
  0x11   : > { %p915_p11 = pnand %p603_p9, %p1143_p1 }
  0x13   : > { %p676_p13 = pneg %p915_p11 }
  0x15   : > { %p677_p0 = pnand %p676_p13, %p675_p12 }
  0x17   : > { %p678_p3 = pneg %p677_p0 }
  0x19   : > { %p683_p7 = pnand %p681_p5, %p678_p3 }
  0x1b   : > { %686 = shalt.err (!%p683_p7)
}
  0x1c   : > { %s687_s6 = scalar_lea.vmem %s908_s22, 3456  ;;  %p695_p2 = scmp.lt.s32.totalorder %s908_s22, %s908_s22 }
  0x1d   : > { %p688_p9 = scmp.ne.s32.totalorder %s908_s22, %s687_s6  ;;  %p696_p12 = scmp.lt.s32.totalorder %s687_s6, %s687_s6 }
  0x1f   : > { %p690_p10 = pnand %p688_p9, %p676_p13  ;;  %p697_p0 = por %p696_p12, %p695_p2 }
  0x21   : > { %p691_p1 = pneg %p690_p10 }
  0x23   : > { %p698_p6 = pnand %p697_p0, %p691_p1 }
  0x25   : > { %701 = shalt.err (!%p698_p6)
}
  0x26   : > { %s834_s7 = smov 128   ;;  %s835_s8 = smov 8  }
  0x27   : > { %606 = dma.hbm_to_vmem [thread:$0]  (!%p915_p11), %s1140_s1, 3456, %s908_s22, [#allocation7], %s834_s7, %s834_s7, %s835_s8  }
  0x28   : > { %s702_s21 = scalar_lea.hbm %s1141_s2, 32 }
  0x29   : > { %p703_p1 = scmp.ne.s32.totalorder %s1141_s2, %s702_s21  ;;  %p709_p10 = scmp.lt.u32.totalorder %s702_s21, %s1141_s2 }
  0x2b   : > { %p705_p2 = pnand %p703_p1, %p676_p13 }
  0x2d   : > { %p706_p6 = pneg %p705_p2 }
  0x2f   : > { %p711_p3 = pnand %p709_p10, %p706_p6 }
  0x31   : > { %714 = shalt.err (!%p711_p3)
}
  0x32   : > { %s715_s22 = scalar_lea.vmem %s919_s25, 32  ;;  %p723_p12 = scmp.lt.s32.totalorder %s919_s25, %s919_s25 }
  0x33   : > { %p716_p5 = scmp.ne.s32.totalorder %s919_s25, %s715_s22  ;;  %p724_p0 = scmp.lt.s32.totalorder %s715_s22, %s715_s22 }
  0x35   : > { %p718_p7 = pnand %p716_p5, %p676_p13  ;;  %p725_p1 = por %p724_p0, %p723_p12 }
  0x37   : > { %p719_p9 = pneg %p718_p7 }
  0x39   : > { %p726_p2 = pnand %p725_p1, %p719_p9 }
  0x3b   : > { %729 = shalt.err (!%p726_p2)
}
  0x3c   : > { %609 = dma.hbm_to_vmem [thread:$0]  (!%p915_p11), %s1141_s2, 32, %s919_s25, [#allocation7]  }
  0x3d   : > { %s977_s4 = sadd.s32 1, %s830_s15   ;;  %s27_s23 = sadd.s32 1, %s826_s14 }
  0x3e   : > { %s24_s5 = ssub.s32 %s830_s15, %s977_s4  ;;  %p34_p13 = scmp.ne.s32.totalorder %s826_s14, %s822_s13 }
  0x3f   : > { %p25_p6 = scmp.eq.s32.totalorder %s24_s5, 0  ;;  %p35_p10 = scmp.eq.s32.totalorder %s830_s15, 0 }
  0x40   : > { %p1150_p3 = scmp.eq.s32.totalorder %s885_s16, 1  ;;  %p620_p7 = scmp.lt.s32.totalorder %s830_s15, 2 }
  0x41   : > { %s993_s9 = scalar_select %p25_p6, %s826_s14, %s27_s23  }
  0x42   : > { %p987_p5 = por %p1150_p3, %p34_p13  ;;  %p36_p9 = por %p35_p10, %p34_p13 }
  0x43   : > { %s156_s10 = sand.u32 1, %s826_s14   ;;  %s589_s25 = smul.u32 384, %s830_s15 }
  0x44   : > { %s1151_s6 = scalar_select %p987_p5, 1, 0 }
  0x45   : > { %s588_s11 = smul.u32 24, %s156_s10  ;;  %p997_p11 = pnand %p620_p7, %p36_p9 }
  0x46   : > { %s1004_s26 = scalar_lea.hbm %s1139_s0, %s589_s25  ;;  %s1008_s22 = scalar_lea.sflag [#allocation4], %s156_s10 }
  0x47   : > { %s160_s27 = scalar_lea.vmem [#allocation3], %s588_s11  ;;  %s730_s29 = scalar_lea.hbm %s1004_s26, 384 }
  0x48   : > { %s167_s28 = sshll.u32 %s160_s27, 4  ;;  %p731_p12 = scmp.ne.s32.totalorder %s1004_s26, %s730_s29  ;;  %s1006_s28 = int_to_ptr.vmem [resolvable:$true] %s167_s28 }
  0x49   : > { %p732_p0 = pneg %p997_p11  ;;  %s735_s5 = scalar_lea.hbm %s1139_s0, 768 }
  0x4a   : > { %p736_p13 = scmp.lt.u32.totalorder %s1004_s26, %s1139_s0  ;;  %p737_p6 = scmp.lt.u32.totalorder %s735_s5, %s730_s29 }
  0x4b   : > { %p733_p1 = pnand %p732_p0, %p731_p12  ;;  %p739_p3 = scmp.lt.u32.totalorder %s730_s29, %s1004_s26 }
  0x4c   : > { %p738_p10 = por %p737_p6, %p736_p13 }
  0x4d   : > { %p734_p2 = pneg %p733_p1 }
  0x4e   : > { %p740_p7 = por %p739_p3, %p738_p10 }
  0x50   : > { %p741_p9 = pnand %p740_p7, %p734_p2 }
  0x52   : > { %744 = shalt.err (!%p741_p9)
}
  0x53   : > { %s745_s10 = scalar_lea.vmem %s1006_s28, 384  ;;  %s836_s11 = smov [#allocation3]  }
  0x54   : > { %p746_p12 = scmp.ne.s32.totalorder %s1006_s28, %s745_s10  ;;  %s750_s24 = sshll.u32 %s836_s11, 4  ;;  %s751_s24 = int_to_ptr.vmem [resolvable:$false] %s750_s24 }
  0x55   : > { %s752_s27 = scalar_lea.vmem %s751_s24, 768  ;;  %p753_p4 = scmp.lt.s32.totalorder %s1006_s28, %s751_s24 }
  0x56   : > { %p748_p1 = pnand %p746_p12, %p732_p0  ;;  %p754_p13 = scmp.lt.s32.totalorder %s752_s27, %s745_s10 }
  0x58   : > { %p749_p5 = pneg %p748_p1  ;;  %p755_p6 = por %p754_p13, %p753_p4 }
  0x5a   : > { %p756_p10 = pnand %p755_p6, %p749_p5 }
  0x5c   : > { %759 = shalt.err (!%p756_p10)
}
  0x5d   : > { %613 = dma.hbm_to_vmem [thread:$0]  (!%p997_p11), %s1004_s26, 384, %s1006_s28, %s1008_s22, %s834_s7, %s834_s7, %s835_s8  }
  0x5e   : > { %179 = sbr.rel (%p904_p8) target bundleno = 496 (0x1f0), region = 32  ;;  %s1042_s29 = sand.u32 (!%p904_p8), 1, %s822_s13  }
  0x5f   : > { %s590_s30 = smul.u32 (!%p904_p8), 24, %s1042_s29  ;;  %s182_s23 = scalar_lea.sflag (!%p904_p8), [#allocation4], %s1042_s29 }
  0x60   : > { %p1153_p4 = scmp.ne.s32.totalorder (!%p904_p8), %s1146_s18, 0 }
  0x61   : > { %s1046_s5 = scalar_lea.vmem (!%p904_p8), [#allocation3], %s590_s30 }
  0x65   : > { %805 = dma.done.wait (%p1153_p4), %s182_s23, 384  }
  0x66   : > { %807 = vsyncadd (%p1153_p4), %s182_s23, 4294966912  ;;  %p1154_p5 = scmp.eq.s32.totalorder %s885_s16, 0 }
  0x68   : > { %809 = dma.done.wait (%p1154_p5), [#allocation7], 3488   ;;  %p1155_p8 = pmov %p1154_p5 }
  0x69   : > { %v837_v0 = vmov 0.0|0.0   ;;  %v221_v1 = vld [vmem:[%s1046_s5 + $0x1] sm:$0xff]  ;;  %s838_s20 = smov 72   ;;  %s839_s18 = smov 16   ;;  %v222_v3 = vld [vmem:[%s1046_s5 + $0x9] sm:$0xff]  ;;  %vm218_vm0 = vcmask 588800  }
  0x6a   : > { %811 = vsyncadd (%p1155_p8), [#allocation7], 4294963808  ;;  %521 = vmatprep.subr.bf16.mxu0 %v837_v0  ;;  %560 = vmatprep.subr.bf16.mxu1 %v837_v0  ;;  %v237_v2 = vld [vmem:[%s1046_s5 + $0x2] sm:$0xff]  ;;  %v254_v4 = vld [vmem:[#allocation6] sm:$0xff]  ;;  %v840_v46 = vmov 0.0   ;;  %vm231_vm1 = vcmask 1048128  }
  0x6b   : > { %225 = vrot.lane.b32.xlu0 %v221_v1, %s838_s20  ;;  %241 = vrot.lane.b32.xlu1 %v237_v2, %s839_s18  ;;  %v255_v5 = vld [vmem:[#allocation6 + $0x8] sm:$0xff]  ;;  %v238_v6 = vld [vmem:[%s1046_s5 + $0xa] sm:$0xff]  ;;  %vm233_vm2 = vcmask 130048   ;;  %vm247_vm3 = vcmask 720000   ;;  %vm281_vm4 = vcmask 719872   ;;  %s508_s7 = sshll.u32 %s1042_s29, 4 }
  0x6c   : > { %v522_v7 = vpack.c.bf16 %v255_v5, %v254_v4  ;;  %v256_v8 = vld [vmem:[#allocation6 + $0x10] sm:$0xff]  ;;  %v257_v9 = vld [vmem:[#allocation6 + $0x18] sm:$0xff]  ;;  %v258_v11 = vld [vmem:[#allocation6 + $0x20] sm:$0xff]  ;;  %s215_s8 = scalar_lea.vmem [#allocation9], %s508_s7  ;;  %s520_s26 = sshll.u32 %s885_s16, 8 }
  0x6d   : > { %v525_v10 = vpack.c.bf16 %v257_v9, %v256_v8  ;;  %v259_v12 = vld [vmem:[#allocation6 + $0x28] sm:$0xff]  ;;  %v260_v15 = vld [vmem:[#allocation6 + $0x30] sm:$0xff]  ;;  %v261_v16 = vld [vmem:[#allocation6 + $0x38] sm:$0xff]  ;;  %s407_s17 = sshll.u32 %s215_s8, 4  ;;  %s1095_s25 = scalar_lea.hbm %s1142_s3, %s520_s26  ;;  %s1090_s17 = int_to_ptr.vmem [resolvable:$true] %s407_s17 }
  0x6e   : > { %523 = vmatpush1.bf16.msra.mxu0 %v522_v7  ;;  %574 = vmatpush1.bf16.msra.mxu1 %v522_v7  ;;  %v528_v13 = vpack.c.bf16 %v259_v12, %v258_v11  ;;  %v216_v14 = vld [vmem:[%s1046_s5] sm:$0xff]  ;;  %v217_v17 = vld [vmem:[%s1046_s5 + $0x8] sm:$0xff]  ;;  %v531_v18 = vpack.c.bf16 %v261_v16, %v260_v15  ;;  %v262_v19 = vld [vmem:[#allocation6 + $0x40] sm:$0xff]  ;;  %s394_s21 = scalar_lea.sflag [#allocation5], %s1042_s29  ;;  %s760_s10 = scalar_lea.vmem %s1090_s17, 256 }
  0x6f   : > { %227 = vrot.lane.b32.xlu0 %v222_v3, %s838_s20  ;;  %243 = vrot.lane.b32.xlu1 %v238_v6, %s839_s18  ;;  %219 = vst.msk [vmem:[#allocation2] sm:$0xff] %vm218_vm0, %v216_v14  ;;  %220 = vst.msk [vmem:[#allocation2 + $0x10] sm:$0xff] %vm218_vm0, %v217_v17  ;;  %v263_v20 = vld [vmem:[#allocation6 + $0x48] sm:$0xff]  ;;  %v264_v22 = vld [vmem:[#allocation6 + $0x50] sm:$0xff]  ;;  %p761_p11 = scmp.ne.s32.totalorder %s1090_s17, %s760_s10  ;;  %p1156_p0 = scmp.ne.s32.totalorder %s1151_s6, 0 }
  0x70   : > { %524 = vmatprep.subr.bf16.mxu0 %v837_v0  ;;  %561 = vmatprep.subr.bf16.mxu1 %v837_v0  ;;  %v534_v21 = vpack.c.bf16 %v263_v20, %v262_v19  ;;  %v265_v23 = vld [vmem:[#allocation6 + $0x58] sm:$0xff]  ;;  %v266_v25 = vld [vmem:[#allocation6 + $0x60] sm:$0xff]  ;;  %v267_v26 = vld [vmem:[#allocation6 + $0x68] sm:$0xff]  ;;  %s841_s16 = smov [#allocation9]  }
  0x71   : > { %v537_v24 = vpack.c.bf16 %v265_v23, %v264_v22  ;;  %v540_v27 = vpack.c.bf16 %v267_v26, %v266_v25  ;;  %v268_v28 = vld [vmem:[#allocation6 + $0x70] sm:$0xff]  ;;  %v269_v29 = vld [vmem:[#allocation6 + $0x78] sm:$0xff]  ;;  %v270_v31 = vld [vmem:[#allocation6 + $0x80] sm:$0xff]  ;;  %p762_p2 = pnand %p761_p11, %p1156_p0  ;;  %s764_s11 = sshll.u32 %s841_s16, 4  ;;  %s765_s11 = int_to_ptr.vmem [resolvable:$false] %s764_s11 }
  0x72   : > { %526 = vmatpush1.bf16.msra.mxu0 %v525_v10  ;;  %575 = vmatpush1.bf16.msra.mxu1 %v525_v10  ;;  %v543_v30 = vpack.c.bf16 %v269_v29, %v268_v28  ;;  %v271_v32 = vld [vmem:[#allocation6 + $0x88] sm:$0xff]  ;;  %v272_v34 = vld [vmem:[#allocation6 + $0x90] sm:$0xff]  ;;  %v273_v35 = vld [vmem:[#allocation6 + $0x98] sm:$0xff]  ;;  %s766_s24 = scalar_lea.vmem %s765_s11, 512  ;;  %p767_p7 = scmp.lt.s32.totalorder %s1090_s17, %s765_s11 }
  0x73   : > { %527 = vmatprep.subr.bf16.mxu0 %v837_v0  ;;  %562 = vmatprep.subr.bf16.mxu1 %v837_v0  ;;  %v546_v33 = vpack.c.bf16 %v271_v32, %v270_v31  ;;  %v549_v36 = vpack.c.bf16 %v273_v35, %v272_v34  ;;  %v274_v37 = vld [vmem:[#allocation6 + $0xa0] sm:$0xff]  ;;  %v275_v38 = vld [vmem:[#allocation6 + $0xa8] sm:$0xff]  ;;  %v276_v40 = vld [vmem:[#allocation6 + $0xb0] sm:$0xff]  ;;  %p763_p3 = pneg %p762_p2  ;;  %p768_p9 = scmp.lt.s32.totalorder %s766_s24, %s760_s10 }
  0x74   : > { %v552_v39 = vpack.c.bf16 %v275_v38, %v274_v37  ;;  %v277_v41 = vld [vmem:[#allocation6 + $0xb8] sm:$0xff]  ;;  %v278_v43 = vld [vmem:[#allocation6 + $0xc0] sm:$0xff]  ;;  %v279_v44 = vld [vmem:[#allocation6 + $0xc8] sm:$0xff] }
  0x75   : > { %v555_v42 = vpack.c.bf16 %v277_v41, %v276_v40  ;;  %v558_v45 = vpack.c.bf16 %v279_v44, %v278_v43  ;;  %v280_v47 = vld [vmem:[#allocation6 + $0xd0] sm:$0xff]  ;;  %v511_v56 = vld [vmem:[#allocation8] ss:$0 sm:$0xff]  ;;  %v512_v58 = vld [vmem:[#allocation8 + $0x1] ss:$0 sm:$0xff]  ;;  %p769_p12 = por %p768_p9, %p767_p7 }
  0x76   : > { %529 = vmatpush1.bf16.msra.mxu0 %v528_v13  ;;  %576 = vmatpush1.bf16.msra.mxu1 %v528_v13 }
  0x77   : > { %530 = vmatprep.subr.bf16.mxu0 %v837_v0  ;;  %563 = vmatprep.subr.bf16.mxu1 %v837_v0  ;;  %p770_p1 = pnand %p769_p12, %p763_p3 }
  0x7a   : > { %532 = vmatpush1.bf16.msra.mxu0 %v531_v18  ;;  %577 = vmatpush1.bf16.msra.mxu1 %v531_v18 }
  0x7b   : > { %533 = vmatprep.subr.bf16.mxu0 %v837_v0  ;;  %564 = vmatprep.subr.bf16.mxu1 %v837_v0 }
  0x7e   : > { %535 = vmatpush1.bf16.msra.mxu0 %v534_v21  ;;  %578 = vmatpush1.bf16.msra.mxu1 %v534_v21 }
  0x7f   : > { %536 = vmatprep.subr.bf16.mxu0 %v837_v0  ;;  %565 = vmatprep.subr.bf16.mxu1 %v837_v0 }
  0x82   : > { %538 = vmatpush1.bf16.msra.mxu0 %v537_v24  ;;  %579 = vmatpush1.bf16.msra.mxu1 %v537_v24 }
  0x83   : > { %539 = vmatprep.subr.bf16.mxu0 %v837_v0  ;;  %566 = vmatprep.subr.bf16.mxu1 %v837_v0 }
  0x86   : > { %541 = vmatpush1.bf16.msra.mxu0 %v540_v27  ;;  %580 = vmatpush1.bf16.msra.mxu1 %v540_v27 }
  0x87   : > { %542 = vmatprep.subr.bf16.mxu0 %v837_v0  ;;  %567 = vmatprep.subr.bf16.mxu1 %v837_v0 }
  0x8a   : > { %544 = vmatpush1.bf16.msra.mxu0 %v543_v30  ;;  %581 = vmatpush1.bf16.msra.mxu1 %v543_v30 }
  0x8b   : > { %545 = vmatprep.subr.bf16.mxu0 %v837_v0  ;;  %568 = vmatprep.subr.bf16.mxu1 %v837_v0 }
  0x8e   : > { %547 = vmatpush1.bf16.msra.mxu0 %v546_v33  ;;  %582 = vmatpush1.bf16.msra.mxu1 %v546_v33 }
  0x8f   : > { %548 = vmatprep.subr.bf16.mxu0 %v837_v0  ;;  %569 = vmatprep.subr.bf16.mxu1 %v837_v0 }
  0x92   : > { %550 = vmatpush1.bf16.msra.mxu0 %v549_v36  ;;  %583 = vmatpush1.bf16.msra.mxu1 %v549_v36 }
  0x93   : > { %551 = vmatprep.subr.bf16.mxu0 %v837_v0  ;;  %570 = vmatprep.subr.bf16.mxu1 %v837_v0 }
  0x96   : > { %553 = vmatpush1.bf16.msra.mxu0 %v552_v39  ;;  %584 = vmatpush1.bf16.msra.mxu1 %v552_v39 }
  0x97   : > { %554 = vmatprep.subr.bf16.mxu0 %v837_v0  ;;  %571 = vmatprep.subr.bf16.mxu1 %v837_v0 }
  0x9a   : > { %556 = vmatpush1.bf16.msra.mxu0 %v555_v42  ;;  %585 = vmatpush1.bf16.msra.mxu1 %v555_v42 }
  0x9b   : > { %557 = vmatprep.subr.bf16.mxu0 %v837_v0  ;;  %572 = vmatprep.subr.bf16.mxu1 %v837_v0 }
  0x9e   : > { %559 = vmatpush1.bf16.msra.mxu0 %v558_v45  ;;  %586 = vmatpush1.bf16.msra.mxu1 %v558_v45 }
  0x9f   : > { %340 = vmatprep.subr.mxu0 %v840_v46  ;;  %573 = vmatprep.subr.mxu1 %v840_v46 }
  0xa2   : > { %341 = vmatpush1.msra.mxu0 %v280_v47  ;;  %587 = vmatpush1.msra.mxu1 %v280_v47 }
  0xdd   : > { %v226_v48 = vpop.permute.xlu0 %225  ;;  %v242_v49 = vpop.permute.xlu1 %241 }
  0xde   : > { %232 = vst.msk [vmem:[#allocation2] sm:$0xff] %vm231_vm1, %v226_v48 }
  0xdf   : > { %234 = vst.msk [vmem:[#allocation2 + $0x8] sm:$0xff] %vm233_vm2, %v226_v48 }
  0xe0   : > { %248 = vst.msk [vmem:[#allocation2 + $0x8] sm:$0xff] %vm247_vm3, %v242_v49 }
  0xe1   : > { %v228_v50 = vpop.permute.xlu0 %227  ;;  %v244_v51 = vpop.permute.xlu1 %243 }
  0xe2   : > { %235 = vst.msk [vmem:[#allocation2 + $0x10] sm:$0xff] %vm231_vm1, %v228_v50 }
  0xe3   : > { %236 = vst.msk [vmem:[#allocation2 + $0x18] sm:$0xff] %vm233_vm2, %v228_v50 }
  0xe4   : > { %249 = vst.msk [vmem:[#allocation2 + $0x18] sm:$0xff] %vm247_vm3, %v244_v51 }
  0xe5   : > { %v250_v53 = vld [vmem:[#allocation2] sm:$0xff] }
  0xe7   : > { %v251_v52 = vld [vmem:[#allocation2 + $0x8] sm:$0xff] }
  0xe8   : > { %509 = vmatprep.mubr.msk.f32.mxu0 %vm281_vm4, %v251_v52 }
  0xe9   : > { %353 = vmatmul.mubr.f32.vlgmr.msra.gmra.mrb[0].mxu0 %v250_v53  ;;  %v252_v55 = vld [vmem:[#allocation2 + $0x10] sm:$0xff] }
  0xeb   : > { %v253_v54 = vld [vmem:[#allocation2 + $0x18] sm:$0xff] }
  0xec   : > { %510 = vmatprep.mubr.msk.f32.mxu1 %vm281_vm4, %v253_v54 }
  0xed   : > { %358 = vmatmul.mubr.f32.vlgmr.msra.gmra.mrb[0].mxu1 %v252_v55 }
 0x1bc   : > { %v354_v57 = vpop.f32.mrb[0].mxu0 }
 0x1bd   : > { %v368_v59 = vmul.f32 %v511_v56, %v354_v57  ;;  %v356_v60 = vpop.f32.mrb[1].mxu0 }
 0x1bf   : > { %v375_v61 = vadd.f32 %v512_v58, %v368_v59 }
 0x1c0   : > { %v359_v62 = vpop.f32.mrb[0].mxu1 }
 0x1c1   : > { %v513_v63 = vmul.f32 -1.442695, %v375_v61  ;;  %v369_v0 = vmul.f32 %v511_v56, %v359_v62  ;;  %v361_v1 = vpop.f32.mrb[1].mxu1 }
 0x1c3   : > { %666 = vpow2.f32 %v513_v63  ;;  %v376_v2 = vadd.f32 %v512_v58, %v369_v0 }
 0x1c5   : > { %v514_v3 = vmul.f32 -1.442695, %v376_v2 }
 0x1c7   : > { %668 = vpow2.f32 %v514_v3 }
 0x1cd   : > { %v667_v4 = vpop.eup %666 }
 0x1ce   : > { %v383_v5 = vadd.f32 1.0, %v667_v4 }
 0x1d0   : > { %670 = vrcp.f32 %v383_v5 }
 0x1d1   : > { %v669_v6 = vpop.eup %668 }
 0x1d2   : > { %v384_v7 = vadd.f32 1.0, %v669_v6 }
 0x1d4   : > { %672 = vrcp.f32 %v384_v7 }
 0x1da   : > { %v671_v8 = vpop.eup %670 }
 0x1db   : > { %v389_v9 = vmul.f32 %v671_v8, %v375_v61 }
 0x1dd   : > { %391 = vst [vmem:[%s215_s8] sm:$0xff] %v389_v9 }
 0x1de   : > { %v673_v10 = vpop.eup %672 }
 0x1df   : > { %v390_v11 = vmul.f32 %v673_v10, %v376_v2 }
 0x1e1   : > { %392 = vst [vmem:[%s215_s8 + $0x8] sm:$0xff] %v390_v11 }
 0x1e2   : > { %773 = shalt.err (!%p770_p1)
}
 0x1e3   : > { %s774_s27 = scalar_lea.hbm %s1095_s25, 256  ;;  %s778_s5 = scalar_lea.hbm %s1142_s3, 512 }
 0x1e4   : > { %p775_p13 = scmp.ne.s32.totalorder %s1095_s25, %s774_s27  ;;  %p779_p4 = scmp.lt.u32.totalorder %s1095_s25, %s1142_s3 }
 0x1e5   : > { %p780_p5 = scmp.lt.u32.totalorder %s778_s5, %s774_s27  ;;  %p782_p11 = scmp.lt.u32.totalorder %s774_s27, %s1095_s25 }
 0x1e6   : > { %p776_p6 = pnand %p775_p13, %p1156_p0 }
 0x1e7   : > { %p781_p8 = por %p780_p5, %p779_p4 }
 0x1e8   : > { %p777_p10 = pneg %p776_p6 }
 0x1e9   : > { %p783_p2 = por %p782_p11, %p781_p8 }
 0x1eb   : > { %p784_p3 = pnand %p783_p2, %p777_p10 }
 0x1ed   : > { %787 = shalt.err (!%p784_p3)
}
 0x1ee   : > { %s842_s7 = smov 128   ;;  %s843_s8 = smov 8  }
 0x1ef   : > { %601 = dma.vmem_to_hbm [thread:$0]  (%p1156_p0), %s1090_s17, 256, %s1095_s25, %s394_s21, %s842_s7, %s842_s7, %s843_s8  }
 0x1f0 PF: > { %s422_s26 = sand.u32 1, %s818_s12   ;;  %p1157_p7 = scmp.ne.s32.totalorder %s1147_s19, 0 }
 0x1f1   : > { %p1158_p9 = scmp.ge.s32.totalorder %s830_s15, 2  ;;  %s423_s28 = scalar_lea.sflag [#allocation5], %s422_s26 }
 0x1f3   : > { %p615_p12 = pnand %p1158_p9, %p1157_p7 }
 0x1f5   : > { %813 = dma.done.wait (!%p615_p12), %s423_s28, 256  }
 0x1f6   : > { %815 = vsyncadd (!%p615_p12), %s423_s28, 4294967040  ;;  %p17_p1 = scmp.ge.s32.totalorder %s977_s4, 4   ;;  %s1159_s12 = smov %s822_s13 }
 0x1f7   : > { %s1160_s13 = smov %s826_s14  ;;  %s1161_s14 = smov %s993_s9 }
 0x1f8   : > { %s1162_s15 = smov %s977_s4  ;;  %19 = sbr.rel (!%p17_p1) target bundleno = 6 (0x6), region = 85 }
 0x1ff   :  { %428 = vsyncpa [#allocation4], 1 }
 0x200   :  { %430 = vsyncpa [#allocation4 + $0x1], 1 }
 0x201   :  { %431 = vsyncpa [#allocation7], 1 }
 0x202   :  { %432 = vsyncpa [#allocation5], 1 }
 0x203   :  { %434 = vsyncpa [#allocation5 + $0x1], 1 }

</bundles_post_ra>
